<compile_context>
chip_gen: v7x
topology: tpu7x:2x2x1
jax: 0.10.0
libtpu: 0.0.40
codegen_flags: <defaults>
</compile_context>

<pallas_src>
import functools

import jax
import jax.numpy as jnp
from jax.experimental import pallas as pl
from jax.experimental.pallas import tpu as pltpu


def _round_up(x, m):
    return (x + m - 1) // m * m


def _cdiv(a, b):
    return -(-a // b)


_VPU_L1_MAX_K = 16  # below this, layer 1 runs as broadcast FMAs on the VPU


def dqn_kernel(x_ref, w1_ref, b1_ref, w2_ref, b2_ref, w3_ref, b3_ref, o_ref,
               *, out_dim, l1_on_vpu):
    # ---- Layer 1: Linear(in_dim, 128) + ReLU -------------------------------
    if l1_on_vpu:
        # Tiny K: unrolled broadcast FMAs on the VPU, f32 accumulation.
        x = x_ref[...].astype(jnp.float32)          # (tb, in_dim)
        w1 = w1_ref[...].astype(jnp.float32)        # (in_dim, 128)
        in_dim = x.shape[1]
        acc = x[:, 0:1] * w1[0:1, :]
        for k in range(1, in_dim):
            acc = acc + x[:, k:k + 1] * w1[k:k + 1, :]
        h1 = jnp.maximum(acc + b1_ref[...], 0.0)
    else:
        h1 = jnp.dot(x_ref[...], w1_ref[...],
                     preferred_element_type=jnp.float32) + b1_ref[...]
        h1 = jnp.maximum(h1, 0.0)

    # ---- Layer 2: Linear(128, 256) + ReLU (bf16 MXU, f32 accumulate) -------
    h2 = jnp.dot(h1.astype(jnp.bfloat16), w2_ref[...],
                 preferred_element_type=jnp.float32) + b2_ref[...]
    h2 = jnp.maximum(h2, 0.0)

    # ---- Layer 3: Linear(256, out_dim), no activation -----------------------
    # w3/b3 are lane-padded VMEM residents (padded once at prep time) so the
    # MXU pass is full width; only the real out_dim columns hit HBM.
    out = jnp.dot(h2.astype(jnp.bfloat16), w3_ref[...],
                  preferred_element_type=jnp.float32) + b3_ref[...]
    o_ref[...] = out[:, :out_dim].astype(o_ref.dtype)


def prepare_params(params):
    """One-time weight cast/pad (hoisted out of the per-call path)."""
    w1, b1 = params["w1"], params["b1"]
    w2, b2 = params["w2"], params["b2"]
    w3, b3 = params["w3"], params["b3"]
    h2_dim, out_dim = w3.shape
    out_pad = _round_up(out_dim, 128)
    w3p = jnp.zeros((h2_dim, out_pad), jnp.bfloat16).at[:, :out_dim].set(
        w3.astype(jnp.bfloat16))
    b3p = jnp.zeros((1, out_pad), jnp.float32).at[:, :out_dim].set(
        b3.reshape(1, -1).astype(jnp.float32))
    return {
        "w1": w1.astype(jnp.bfloat16),
        "b1": b1.reshape(1, -1).astype(jnp.float32),
        "w2": w2.astype(jnp.bfloat16),
        "b2": b2.reshape(1, -1).astype(jnp.float32),
        "w3": w3p,
        "b3": b3p,
        "out_dim": out_dim,
    }


def dqn_forward(x, prepped, *, max_tile_b=2048):
    """x: (B, input_dim) float32. prepped: output of prepare_params."""
    w1, b1, w2, b2, w3, b3 = (prepped["w1"], prepped["b1"], prepped["w2"],
                              prepped["b2"], prepped["w3"], prepped["b3"])
    out_dim = prepped["out_dim"]
    B, in_dim = x.shape
    h1_dim = w1.shape[1]          # 128
    h2_dim = w2.shape[1]          # 256
    out_pad = w3.shape[1]

    # Batch tiling: choose the tile count first (>=2 tiles at mid/large batch
    # so the "parallel" axis shards across v7x's two TensorCores), then the
    # smallest 8-aligned tile covering B to minimize dead padded rows.
    num_tiles = _cdiv(B, max_tile_b)
    if B >= 256:
        num_tiles = max(num_tiles, 2)
    tb = _round_up(_cdiv(B, num_tiles), 8)
    b_pad = tb * num_tiles

    # x streams in bf16 and is NOT lane-padded (last block dim == array dim).
    xb = x.astype(jnp.bfloat16)
    if b_pad != B:
        xb = jnp.zeros((b_pad, in_dim), jnp.bfloat16).at[:B, :].set(xb)

    l1_on_vpu = in_dim <= _VPU_L1_MAX_K

    def resident(a):
        # Constant index map -> stays VMEM-resident across grid steps.
        # (Weights are ~160KB total, so the default double buffer is cheap.)
        return pl.BlockSpec(a.shape, lambda i: (0,) * a.ndim)

    flops = 2 * b_pad * (in_dim * h1_dim + h1_dim * h2_dim + h2_dim * out_pad)
    bytes_accessed = (xb.size * 2 + b_pad * out_dim * 4
                      + (w1.size + w2.size + w3.size) * 2
                      + (b1.size + b2.size + b3.size) * 4)

    kernel = functools.partial(dqn_kernel, out_dim=out_dim,
                               l1_on_vpu=l1_on_vpu)

    out = pl.pallas_call(
        kernel,
        out_shape=jax.ShapeDtypeStruct((b_pad, out_dim), jnp.float32),
        grid=(num_tiles,),
        in_specs=[
            pl.BlockSpec((tb, in_dim), lambda i: (i, 0)),   # x: one tile/step
            resident(w1), resident(b1),
            resident(w2), resident(b2),
            resident(w3), resident(b3),
        ],
        # Unpadded output block: masked store beats 64x inflated writeback.
        out_specs=pl.BlockSpec((tb, out_dim), lambda i: (i, 0)),
        compiler_params=pltpu.CompilerParams(
            dimension_semantics=("parallel",),
            vmem_limit_bytes=32 * 1024 * 1024),
        cost_estimate=pl.CostEstimate(
            flops=flops, transcendentals=0, bytes_accessed=bytes_accessed),
    )(xb, w1, b1, w2, b2, w3, b3)

    return out[:B] if b_pad != B else out


def init_params(key, input_dim, output_dim):
    """PyTorch-style Linear init; weights stored (in, out) so kernel does x @ W."""
    def linear(key, fan_in, fan_out):
        kw, kb = jax.random.split(key)
        bound = 1.0 / jnp.sqrt(fan_in)
        w = jax.random.uniform(kw, (fan_in, fan_out), jnp.float32, -bound, bound)
        b = jax.random.uniform(kb, (1, fan_out), jnp.float32, -bound, bound)
        return w, b

    k1, k2, k3 = jax.random.split(key, 3)
    w1, b1 = linear(k1, input_dim, 128)
    w2, b2 = linear(k2, 128, 256)
    w3, b3 = linear(k3, 256, output_dim)
    return {"w1": w1, "b1": b1, "w2": w2, "b2": b2, "w3": w3, "b3": b3}


def dqn_reference(x, p):
    # Mimics the kernel's mixed precision (bf16-rounded operands, f32
    # accumulation; layer 1 in f32 like the kernel's VPU path) so the
    # comparison is tight.
    bf = lambda a: a.astype(jnp.bfloat16)
    h1 = jnp.maximum(
        jnp.dot(bf(x).astype(jnp.float32), bf(p["w1"]).astype(jnp.float32))
        + p["b1"].reshape(1, -1), 0.0)
    h2 = jnp.maximum(
        jnp.dot(bf(h1), bf(p["w2"]), preferred_element_type=jnp.float32)
        + p["b2"].reshape(1, -1), 0.0)
    return (jnp.dot(bf(h2), bf(p["w3"]), preferred_element_type=jnp.float32)
            + p["b3"].reshape(1, -1))


if __name__ == "__main__":
    key = jax.random.PRNGKey(0)
    kx, kp = jax.random.split(key)

    batch = 2
    input_dim = 4     # e.g. CartPole observation dim
    output_dim = 2    # e.g. CartPole action dim

    x = jax.random.normal(kx, (batch, input_dim), jnp.float32)
    params = init_params(kp, input_dim, output_dim)
    prepped = prepare_params(params)   # hoisted weight cast/pad (done once)

    out = dqn_forward(x, prepped)
    jax.block_until_ready(out)

    ref = dqn_reference(x, params)
    assert out.shape == (batch, output_dim)
    assert jnp.allclose(out, ref, atol=2e-2, rtol=2e-2), (
        f"max abs diff {jnp.max(jnp.abs(out - ref))}")

    print("KERNEL_OK")
</pallas_src>

<mosaic_0001>
module attributes {stable_mosaic.version = 11 : i64} {
  func.func @dqn_kernel(%arg0: i32, %arg1: memref<8x4xbf16, #tpu.memory_space<vmem>>, %arg2: memref<4x128xbf16, #tpu.memory_space<vmem>>, %arg3: memref<1x128xf32, #tpu.memory_space<vmem>>, %arg4: memref<128x256xbf16, #tpu.memory_space<vmem>>, %arg5: memref<1x256xf32, #tpu.memory_space<vmem>>, %arg6: memref<256x128xbf16, #tpu.memory_space<vmem>>, %arg7: memref<1x128xf32, #tpu.memory_space<vmem>>, %arg8: memref<8x2xf32, #tpu.memory_space<vmem>>) attributes {dimension_semantics = [#tpu.dimension_semantics<parallel>], iteration_bounds = array<i64: 1>, scalar_prefetch = 0 : i64, scratch_operands = 0 : i64, tpu.core_type = #tpu.core_type<tc>, window_params = [{transform_indices = @transform_0, window_bounds = array<i64: 8, 4>}, {pipeline_mode = #tpu.pipeline_mode<synchronous>, transform_indices = @transform_1, window_bounds = array<i64: 4, 128>}, {pipeline_mode = #tpu.pipeline_mode<synchronous>, transform_indices = @transform_2, window_bounds = array<i64: 1, 128>}, {pipeline_mode = #tpu.pipeline_mode<synchronous>, transform_indices = @transform_3, window_bounds = array<i64: 128, 256>}, {pipeline_mode = #tpu.pipeline_mode<synchronous>, transform_indices = @transform_4, window_bounds = array<i64: 1, 256>}, {pipeline_mode = #tpu.pipeline_mode<synchronous>, transform_indices = @transform_5, window_bounds = array<i64: 256, 128>}, {pipeline_mode = #tpu.pipeline_mode<synchronous>, transform_indices = @transform_6, window_bounds = array<i64: 1, 128>}, {transform_indices = @transform_7, window_bounds = array<i64: 8, 2>}]} {
    %c0 = arith.constant 0 : index
    %c0_0 = arith.constant 0 : index
    %0 = vector.load %arg1[%c0, %c0_0] : memref<8x4xbf16, #tpu.memory_space<vmem>>, vector<8x4xbf16>
    %1 = arith.extf %0 : vector<8x4xbf16> to vector<8x4xf32>
    %c0_1 = arith.constant 0 : index
    %c0_2 = arith.constant 0 : index
    %2 = vector.load %arg2[%c0_1, %c0_2] : memref<4x128xbf16, #tpu.memory_space<vmem>>, vector<4x128xbf16>
    %3 = arith.extf %2 : vector<4x128xbf16> to vector<4x128xf32>
    %4 = vector.extract_strided_slice %1 {offsets = [0, 0], sizes = [8, 1], strides = [1, 1]} : vector<8x4xf32> to vector<8x1xf32>
    %5 = vector.extract_strided_slice %3 {offsets = [0, 0], sizes = [1, 128], strides = [1, 1]} : vector<4x128xf32> to vector<1x128xf32>
    %6 = vector.broadcast %4 : vector<8x1xf32> to vector<8x128xf32>
    %7 = vector.broadcast %5 : vector<1x128xf32> to vector<8x128xf32>
    %8 = arith.mulf %6, %7 : vector<8x128xf32>
    %9 = vector.extract_strided_slice %1 {offsets = [0, 1], sizes = [8, 1], strides = [1, 1]} : vector<8x4xf32> to vector<8x1xf32>
    %10 = vector.extract_strided_slice %3 {offsets = [1, 0], sizes = [1, 128], strides = [1, 1]} : vector<4x128xf32> to vector<1x128xf32>
    %11 = vector.broadcast %9 : vector<8x1xf32> to vector<8x128xf32>
    %12 = vector.broadcast %10 : vector<1x128xf32> to vector<8x128xf32>
    %13 = arith.mulf %11, %12 : vector<8x128xf32>
    %14 = arith.addf %8, %13 : vector<8x128xf32>
    %15 = vector.extract_strided_slice %1 {offsets = [0, 2], sizes = [8, 1], strides = [1, 1]} : vector<8x4xf32> to vector<8x1xf32>
    %16 = vector.extract_strided_slice %3 {offsets = [2, 0], sizes = [1, 128], strides = [1, 1]} : vector<4x128xf32> to vector<1x128xf32>
    %17 = vector.broadcast %15 : vector<8x1xf32> to vector<8x128xf32>
    %18 = vector.broadcast %16 : vector<1x128xf32> to vector<8x128xf32>
    %19 = arith.mulf %17, %18 : vector<8x128xf32>
    %20 = arith.addf %14, %19 : vector<8x128xf32>
    %21 = vector.extract_strided_slice %1 {offsets = [0, 3], sizes = [8, 1], strides = [1, 1]} : vector<8x4xf32> to vector<8x1xf32>
    %22 = vector.extract_strided_slice %3 {offsets = [3, 0], sizes = [1, 128], strides = [1, 1]} : vector<4x128xf32> to vector<1x128xf32>
    %23 = vector.broadcast %21 : vector<8x1xf32> to vector<8x128xf32>
    %24 = vector.broadcast %22 : vector<1x128xf32> to vector<8x128xf32>
    %25 = arith.mulf %23, %24 : vector<8x128xf32>
    %26 = arith.addf %20, %25 : vector<8x128xf32>
    %c0_3 = arith.constant 0 : index
    %c0_4 = arith.constant 0 : index
    %27 = vector.load %arg3[%c0_3, %c0_4] : memref<1x128xf32, #tpu.memory_space<vmem>>, vector<1x128xf32>
    %28 = vector.broadcast %27 : vector<1x128xf32> to vector<8x128xf32>
    %29 = arith.addf %26, %28 : vector<8x128xf32>
    %cst = arith.constant 0.000000e+00 : f32
    %30 = vector.broadcast %cst : f32 to vector<8x128xf32>
    %31 = arith.maximumf %29, %30 : vector<8x128xf32>
    %32 = arith.truncf %31 : vector<8x128xf32> to vector<8x128xbf16>
    %c0_5 = arith.constant 0 : index
    %c0_6 = arith.constant 0 : index
    %33 = vector.load %arg4[%c0_5, %c0_6] : memref<128x256xbf16, #tpu.memory_space<vmem>>, vector<128x256xbf16>
    %cst_7 = arith.constant dense<0.000000e+00> : vector<8x256xf32>
    %34 = tpu.matmul %32, %33, %cst_7 {dimension_numbers = #tpu.dot_dimension_numbers<[1], [0], [0], [1], [0, 0, 1, 1], [], []>} : vector<8x128xbf16>, vector<128x256xbf16>, vector<8x256xf32> -> vector<8x256xf32>
    %c0_8 = arith.constant 0 : index
    %c0_9 = arith.constant 0 : index
    %35 = vector.load %arg5[%c0_8, %c0_9] : memref<1x256xf32, #tpu.memory_space<vmem>>, vector<1x256xf32>
    %36 = vector.broadcast %35 : vector<1x256xf32> to vector<8x256xf32>
    %37 = arith.addf %34, %36 : vector<8x256xf32>
    %cst_10 = arith.constant 0.000000e+00 : f32
    %38 = vector.broadcast %cst_10 : f32 to vector<8x256xf32>
    %39 = arith.maximumf %37, %38 : vector<8x256xf32>
    %40 = arith.truncf %39 : vector<8x256xf32> to vector<8x256xbf16>
    %c0_11 = arith.constant 0 : index
    %c0_12 = arith.constant 0 : index
    %41 = vector.load %arg6[%c0_11, %c0_12] : memref<256x128xbf16, #tpu.memory_space<vmem>>, vector<256x128xbf16>
    %cst_13 = arith.constant dense<0.000000e+00> : vector<8x128xf32>
    %42 = tpu.matmul %40, %41, %cst_13 {dimension_numbers = #tpu.dot_dimension_numbers<[1], [0], [0], [1], [0, 0, 1, 1], [], []>} : vector<8x256xbf16>, vector<256x128xbf16>, vector<8x128xf32> -> vector<8x128xf32>
    %c0_14 = arith.constant 0 : index
    %c0_15 = arith.constant 0 : index
    %43 = vector.load %arg7[%c0_14, %c0_15] : memref<1x128xf32, #tpu.memory_space<vmem>>, vector<1x128xf32>
    %44 = vector.broadcast %43 : vector<1x128xf32> to vector<8x128xf32>
    %45 = arith.addf %42, %44 : vector<8x128xf32>
    %46 = vector.extract_strided_slice %45 {offsets = [0, 0], sizes = [8, 2], strides = [1, 1]} : vector<8x128xf32> to vector<8x2xf32>
    %c0_16 = arith.constant 0 : index
    %c0_17 = arith.constant 0 : index
    %47 = vector.load %arg8[%c0_16, %c0_17] : memref<8x2xf32, #tpu.memory_space<vmem>>, vector<8x2xf32>
    tpu.vector_store %arg8[%c0_16, %c0_17], %46 {strides = array<i32>} : memref<8x2xf32, #tpu.memory_space<vmem>>, vector<8x2xf32>,
    return
  }
  func.func @transform_0(%arg0: i32) -> (i32, i32) {
    %c0_i32 = arith.constant 0 : i32
    %c0_i32_0 = arith.constant 0 : i32
    return %arg0, %c0_i32 : i32, i32
  }
  func.func @transform_1(%arg0: i32) -> (i32, i32) {
    %c0_i32 = arith.constant 0 : i32
    %c0_i32_0 = arith.constant 0 : i32
    %c0_i32_1 = arith.constant 0 : i32
    return %c0_i32, %c0_i32_0 : i32, i32
  }
  func.func @transform_2(%arg0: i32) -> (i32, i32) {
    %c0_i32 = arith.constant 0 : i32
    %c0_i32_0 = arith.constant 0 : i32
    %c0_i32_1 = arith.constant 0 : i32
    return %c0_i32, %c0_i32_0 : i32, i32
  }
  func.func @transform_3(%arg0: i32) -> (i32, i32) {
    %c0_i32 = arith.constant 0 : i32
    %c0_i32_0 = arith.constant 0 : i32
    %c0_i32_1 = arith.constant 0 : i32
    return %c0_i32, %c0_i32_0 : i32, i32
  }
  func.func @transform_4(%arg0: i32) -> (i32, i32) {
    %c0_i32 = arith.constant 0 : i32
    %c0_i32_0 = arith.constant 0 : i32
    %c0_i32_1 = arith.constant 0 : i32
    return %c0_i32, %c0_i32_0 : i32, i32
  }
  func.func @transform_5(%arg0: i32) -> (i32, i32) {
    %c0_i32 = arith.constant 0 : i32
    %c0_i32_0 = arith.constant 0 : i32
    %c0_i32_1 = arith.constant 0 : i32
    return %c0_i32, %c0_i32_0 : i32, i32
  }
  func.func @transform_6(%arg0: i32) -> (i32, i32) {
    %c0_i32 = arith.constant 0 : i32
    %c0_i32_0 = arith.constant 0 : i32
    %c0_i32_1 = arith.constant 0 : i32
    return %c0_i32, %c0_i32_0 : i32, i32
  }
  func.func @transform_7(%arg0: i32) -> (i32, i32) {
    %c0_i32 = arith.constant 0 : i32
    %c0_i32_0 = arith.constant 0 : i32
    return %arg0, %c0_i32 : i32, i32
  }
}

</mosaic_0001>

<bundles_post_ra>
// kernel: tpu_custom_call.1
= control target key start
LH: loop header
LB: loop body
LE: loop exit
PB: predicated region body
PF: predicated region fallthrough
CT: control target
= control target key end

     0   :  { %12 = vsyncpa [#allocation3], 0  ;;  %s696_s0 = inlined_call_operand.vmem [shape: bf16[8,4], index: 0, kind: input, shape index: {}]   ;;  %s697_s1 = inlined_call_operand.vmem [shape: bf16[4,128], index: 1, kind: input, shape index: {}]   ;;  %s698_s2 = inlined_call_operand.vmem [shape: f32[1,128], index: 2, kind: input, shape index: {}]   ;;  %s699_s3 = inlined_call_operand.hbm [shape: bf16[128,256], index: 3, kind: input, shape index: {}]   ;;  %s700_s4 = inlined_call_operand.vmem [shape: f32[1,256], index: 4, kind: input, shape index: {}]   ;;  %s701_s5 = inlined_call_operand.hbm [shape: bf16[256,128], index: 5, kind: input, shape index: {}]   ;;  %s702_s6 = inlined_call_operand.vmem [shape: f32[1,128], index: 6, kind: input, shape index: {}]   ;;  %s703_s7 = inlined_call_operand.vmem [shape: f32[8,2], index: 7, kind: output, shape index: {}]  }
   0x1   :  { %13 = vsyncpa [#allocation5], 0  ;;  %s604_s24 = smov [#allocation2]   ;;  %s556_s28 = scalar_lea.hbm %s699_s3, 2048 }
   0x2   :  { %s25_s25 = sshll.u32 %s604_s24, 4  ;;  %p557_p0 = scmp.ne.s32.totalorder %s699_s3, %s556_s28  ;;  %s26_s25 = int_to_ptr.vmem [resolvable:$true] %s25_s25 }
   0x3   :  { %p560_p1 = scmp.lt.u32.totalorder %s556_s28, %s699_s3 }
   0x5   :  { %p562_p2 = pnand %p560_p1, %p557_p0 }
   0x7   :  { %565 = shalt.err (!%p562_p2)
}
   0x8   :  { %s566_s10 = scalar_lea.vmem %s26_s25, 2048  ;;  %p571_p4 = scmp.lt.s32.totalorder %s26_s25, %s26_s25 }
   0x9   :  { %p567_p3 = scmp.ne.s32.totalorder %s26_s25, %s566_s10  ;;  %p572_p5 = scmp.lt.s32.totalorder %s566_s10, %s566_s10 }
   0xb   :  { %p573_p6 = por %p572_p5, %p571_p4 }
   0xd   :  { %p574_p7 = pnand %p573_p6, %p567_p3 }
   0xf   :  { %577 = shalt.err (!%p574_p7)
}
  0x10   :  { %s605_s11 = smov 128   ;;  %s606_s12 = smov 8  }
  0x11   :  { %31 = dma.hbm_to_vmem [thread:$0]  %s699_s3, 2048, %s26_s25, [#allocation3], %s605_s11, %s605_s11, %s606_s12  }
  0x12   :  { %s607_s15 = smov [#allocation4]   ;;  %s578_s19 = scalar_lea.hbm %s701_s5, 2048 }
  0x13   :  { %s39_s16 = sshll.u32 %s607_s15, 4  ;;  %p579_p8 = scmp.ne.s32.totalorder %s701_s5, %s578_s19  ;;  %s40_s16 = int_to_ptr.vmem [resolvable:$true] %s39_s16 }
  0x14   :  { %p582_p9 = scmp.lt.u32.totalorder %s578_s19, %s701_s5 }
  0x16   :  { %p584_p10 = pnand %p582_p9, %p579_p8 }
  0x18   :  { %587 = shalt.err (!%p584_p10)
}
  0x19   :  { %s588_s24 = scalar_lea.vmem %s40_s16, 2048  ;;  %p593_p12 = scmp.lt.s32.totalorder %s40_s16, %s40_s16 }
  0x1a   :  { %p589_p11 = scmp.ne.s32.totalorder %s40_s16, %s588_s24  ;;  %p594_p13 = scmp.lt.s32.totalorder %s588_s24, %s588_s24 }
  0x1c   :  { %p595_p0 = por %p594_p13, %p593_p12 }
  0x1e   :  { %p596_p1 = pnand %p595_p0, %p589_p11 }
  0x20   :  { %599 = shalt.err (!%p596_p1)
}
  0x21   :  { %s608_s3 = smov 64   ;;  %s609_s25 = smov 4  }
  0x22   :  { %45 = dma.hbm_to_vmem [thread:$0]  %s701_s5, 2048, %s40_s16, [#allocation5], %s608_s3, %s608_s3, %s609_s25  }
  0x23   :  { %600 = dma.done.wait [#allocation3], 2048  }
  0x24   :  { %601 = vsyncadd [#allocation3], 4294965248 }
  0x25   :  { %602 = dma.done.wait [#allocation5], 2048  }
  0x26   :  { %603 = vsyncadd [#allocation5], 4294965248  ;;  %v610_v0 = vmov 0   ;;  %v611_v1 = vmov 2   ;;  %v55_v2 = vld [vmem:[%s696_s0] sm:$0xf]  ;;  %v64_v34 = vlaneseq }
  0x27   :  { %511 = vset.pattern.permute.xlu0 %v610_v0  ;;  %513 = vset.pattern.permute.xlu1 %v611_v1  ;;  %v56_v3 = vunpack.c.l.bf16 %v55_v2  ;;  %v516_v4 = vld [vmem:[#allocation2 + $0x4] ss:$8 sps:$4 sm:$0xff]   ;;  %v518_v5 = vld [vmem:[#allocation2] ss:$8 sps:$4 sm:$0xff]   ;;  %v519_v6 = vld [vmem:[#allocation2 + $0x14] ss:$8 sps:$4 sm:$0xff]  }
  0x28   :  { %249 = vmatprep.mubr.bf16.mxu0 %v610_v0  ;;  %217 = vmatprep.subr.bf16.mxu0 %v516_v4  ;;  %v521_v7 = vld [vmem:[#allocation2 + $0x10] ss:$8 sps:$4 sm:$0xff]   ;;  %v522_v8 = vld [vmem:[#allocation2 + $0x24] ss:$8 sps:$4 sm:$0xff]   ;;  %v612_v9 = vmov 1   ;;  %v613_v10 = vmov 3  }
  0x29   :  { %61 = vperm.xlu0 %511, %v56_v3   ;;  %80 = vperm.xlu1 %513, %v56_v3   ;;  %v524_v11 = vld [vmem:[#allocation2 + $0x20] ss:$8 sps:$4 sm:$0xff]   ;;  %v525_v12 = vld [vmem:[#allocation2 + $0x34] ss:$8 sps:$4 sm:$0xff]   ;;  %v527_v13 = vld [vmem:[#allocation2 + $0x30] ss:$8 sps:$4 sm:$0xff]  }
  0x2a   :  { %218 = vmatpush1.bf16.msra.mxu0 %v518_v5  ;;  %v528_v14 = vld [vmem:[#allocation2 + $0x44] ss:$8 sps:$4 sm:$0xff]   ;;  %v530_v15 = vld [vmem:[#allocation2 + $0x40] ss:$8 sps:$4 sm:$0xff]   ;;  %v531_v16 = vld [vmem:[#allocation2 + $0x54] ss:$8 sps:$4 sm:$0xff]  }
  0x2b   :  { %219 = vmatprep.subr.bf16.mxu0 %v519_v6  ;;  %v533_v17 = vld [vmem:[#allocation2 + $0x50] ss:$8 sps:$4 sm:$0xff]   ;;  %v534_v18 = vld [vmem:[#allocation2 + $0x64] ss:$8 sps:$4 sm:$0xff]   ;;  %v536_v22 = vld [vmem:[#allocation2 + $0x60] ss:$8 sps:$4 sm:$0xff]  }
  0x2c   :  { %v540_v19 = vld [vmem:[#allocation4 + $0x40] sm:$0xff]   ;;  %v542_v21 = vld [vmem:[#allocation4 + $0x48] sm:$0xff]   ;;  %v537_v24 = vld [vmem:[#allocation2 + $0x74] ss:$8 sps:$4 sm:$0xff]   ;;  %v65_v35 = vshrl.u32 %v64_v34, 7  ;;  %vm437_vm0 = vcmask 15360  }
  0x2d   :  { %512 = vset.pattern.permute.xlu0 %v612_v9  ;;  %514 = vset.pattern.permute.xlu1 %v613_v10  ;;  %v541_v20 = vld [vmem:[#allocation4] sm:$0xff]   ;;  %v543_v23 = vld [vmem:[#allocation4 + $0x8] sm:$0xff]   ;;  %v544_v25 = vld [vmem:[#allocation4 + $0x50] sm:$0xff]  }
  0x2e   :  { %70 = vperm.xlu0 %512, %v56_v3   ;;  %90 = vperm.xlu1 %514, %v56_v3   ;;  %v539_v26 = vld [vmem:[#allocation2 + $0x70] ss:$8 sps:$4 sm:$0xff]   ;;  %v548_v30 = vld [vmem:[#allocation4 + $0x60] sm:$0xff]   ;;  %v550_v32 = vld [vmem:[#allocation4 + $0x68] sm:$0xff]   ;;  %v66_v38 = vsub.s32 0, %v65_v35  ;;  %v75_v39 = vsub.s32 1, %v65_v35 }
  0x2f   :  { %220 = vmatpush1.bf16.msra.mxu0 %v521_v7  ;;  %479 = vmatprep.subr.bf16.mxu1 %v540_v19  ;;  %v545_v27 = vld [vmem:[#allocation4 + $0x10] sm:$0xff]   ;;  %v546_v28 = vld [vmem:[#allocation4 + $0x58] sm:$0xff]   ;;  %v549_v31 = vld [vmem:[#allocation4 + $0x20] sm:$0xff]   ;;  %v85_v41 = vsub.s32 2, %v65_v35  ;;  %v95_v43 = vsub.s32 3, %v65_v35 }
  0x30   :  { %221 = vmatprep.subr.bf16.mxu0 %v522_v8  ;;  %480 = vmatpush3.bf16.msra.mxu1 %v541_v20  ;;  %v547_v29 = vld [vmem:[#allocation4 + $0x18] sm:$0xff]   ;;  %v551_v33 = vld [vmem:[#allocation4 + $0x28] sm:$0xff]   ;;  %v57_v36 = vld [vmem:[%s697_s1] sm:$0x3] }
  0x31   :  { %481 = vmatprep.subr.bf16.mxu1 %v542_v21  ;;  %v58_v37 = vunpack.c.l.bf16 %v57_v36  ;;  %v445_v56 = vld [vmem:[%s698_s2] ss:$0 sm:$0xff]  ;;  %v552_v61 = vld [vmem:[#allocation4 + $0x70] sm:$0xff]   ;;  %v554_v63 = vld [vmem:[#allocation4 + $0x78] sm:$0xff]  }
  0x32   :  { %515 = vset.pattern.permute.xlu0 %v613_v10  ;;  %v553_v62 = vld [vmem:[#allocation4 + $0x30] sm:$0xff]   ;;  %v555_v0 = vld [vmem:[#allocation4 + $0x38] sm:$0xff]   ;;  %v125_v1 = vld [vmem:[%s700_s4] sm:$0x3] }
  0x33   :  { %222 = vmatpush1.bf16.msra.mxu0 %v524_v11  ;;  %v67_v44 = vrot.slane %v58_v37, %v66_v38  ;;  %v76_v45 = vrot.slane %v58_v37, %v75_v39  ;;  %v86_v46 = vrot.slane %v58_v37, %v85_v41  ;;  %v96_v47 = vrot.slane %v58_v37, %v95_v43 }
  0x34   :  { %223 = vmatprep.subr.bf16.mxu0 %v525_v12  ;;  %482 = vmatpush3.bf16.msra.mxu1 %v543_v23  ;;  %v130_v2 = vrot.slane %v125_v1, %v66_v38  ;;  %v134_v3 = vrot.slane %v125_v1, %v75_v39 }
  0x35   :  { %483 = vmatprep.subr.bf16.mxu1 %v544_v25 }
  0x37   :  { %224 = vmatpush1.bf16.msra.mxu0 %v527_v13 }
  0x38   :  { %225 = vmatprep.subr.bf16.mxu0 %v528_v14  ;;  %484 = vmatpush3.bf16.msra.mxu1 %v545_v27 }
  0x39   :  { %485 = vmatprep.subr.bf16.mxu1 %v546_v28 }
  0x3b   :  { %226 = vmatpush1.bf16.msra.mxu0 %v530_v15  ;;  %v462_v15 = vld [vmem:[%s702_s6] ss:$0 sm:$0xff] }
  0x3c   :  { %227 = vmatprep.subr.bf16.mxu0 %v531_v16  ;;  %486 = vmatpush3.bf16.msra.mxu1 %v547_v29 }
  0x3d   :  { %487 = vmatprep.subr.bf16.mxu1 %v548_v30 }
  0x3f   :  { %228 = vmatpush1.bf16.msra.mxu0 %v533_v17 }
  0x40   :  { %229 = vmatprep.subr.bf16.mxu0 %v534_v18  ;;  %488 = vmatpush3.bf16.msra.mxu1 %v549_v31 }
  0x41   :  { %489 = vmatprep.subr.bf16.mxu1 %v550_v32 }
  0x43   :  { %230 = vmatpush1.bf16.msra.mxu0 %v536_v22 }
  0x44   :  { %231 = vmatprep.subr.bf16.mxu0 %v537_v24  ;;  %490 = vmatpush3.bf16.msra.mxu1 %v551_v33 }
  0x45   :  { %491 = vmatprep.subr.bf16.mxu1 %v552_v61 }
  0x47   :  { %232 = vmatpush1.bf16.msra.mxu0 %v539_v26 }
  0x48   :  { %492 = vmatpush3.bf16.msra.mxu1 %v553_v62 }
  0x49   :  { %493 = vmatprep.subr.bf16.mxu1 %v554_v63 }
  0x4c   :  { %494 = vmatpush3.bf16.msra.mxu1 %v555_v0 }
  0xa8   :  { %v62_v40 = vpop.permute.xlu0 %61  ;;  %v81_v42 = vpop.permute.xlu1 %80 }
  0xa9   :  { %v68_v50 = vmul.f32 %v67_v44, %v62_v40  ;;  %v87_v52 = vmul.f32 %v86_v46, %v81_v42 }
  0xad   :  { %v71_v48 = vpop.permute.xlu0 %70  ;;  %v91_v49 = vpop.permute.xlu1 %90 }
  0xae   :  { %v77_v51 = vmul.f32 %v76_v45, %v71_v48  ;;  %v97_v54 = vmul.f32 %v96_v47, %v91_v49 }
  0xb0   :  { %v78_v53 = vadd.f32 %v77_v51, %v68_v50 }
  0xb2   :  { %v88_v55 = vadd.f32 %v87_v52, %v78_v53 }
  0xb4   :  { %v98_v57 = vadd.f32 %v97_v54, %v88_v55 }
  0xb6   :  { %v106_v58 = vadd.f32 %v445_v56, %v98_v57 }
  0xb8   :  { %v107_v59 = vmax.f32 %v106_v58, 0.0 }
  0xba   :  { %v108_v60 = vpack.c.bf16 %v107_v59, %v107_v59 }
  0xbc   :  { %250 = vmatmul.mubr.bf16.vlgmr.msra.gmra.mrb[0].mxu0 %v108_v60 }
 0x18f   :  { %v251_v4 = vpop.f32.mrb[0].mxu0 }
 0x190   :  { %v252_v5 = vadd.f32 %v251_v4, %v130_v2  ;;  %v253_v6 = vpop.f32.mrb[1].mxu0 }
 0x191   :  { %v254_v7 = vadd.f32 %v253_v6, %v134_v3  ;;  %v255_v8 = vpop.f32.mrb[2].mxu0 }
 0x192   :  { %v258_v9 = vmax.f32 %v252_v5, 0.0  ;;  %v256_v10 = vpop.f32.mrb[3].mxu0 }
 0x193   :  { %v259_v11 = vmax.f32 %v254_v7, 0.0 }
 0x194   :  { %v260_v13 = vpack.c.bf16 %v258_v9, %v258_v9 }
 0x195   :  { %v261_v12 = vpack.c.bf16 %v259_v11, %v259_v11 }
 0x197   :  { %429 = vmatprep.mubr.bf16.mxu1 %v261_v12 }
 0x198   :  { %430 = vmatmul.mubr.bf16.vlgmr.msra.gmra.mrb[0].mxu1 %v260_v13 }
 0x26b   :  { %v495_v14 = vpop.f32.mrb[0].mxu1 }
 0x26c   :  { %v496_v16 = vpop.f32.mrb[1].mxu1 }
 0x26d   :  { %v497_v17 = vadd.f32 %v496_v16, %v495_v14  ;;  %v498_v18 = vpop.f32.mrb[2].mxu1 }
 0x26e   :  { %v499_v19 = vpop.f32.mrb[3].mxu1 }
 0x26f   :  { %v432_v20 = vadd.f32 %v497_v17, %v462_v15 }
 0x271   :  { %438 = vst.msk [vmem:[%s703_s7] sm:$0xff] %vm437_vm0, %v432_v20 }
 0x272   :  { %443 = vsyncpa [#allocation3], 1 }
 0x273   :  { %444 = vsyncpa [#allocation5], 1 }

</bundles_post_ra>
